<compile_context>
chip_gen: v7x
topology: tpu7x:2x2x1
jax: 0.10.0
libtpu: 0.0.40
codegen_flags: <defaults>
</compile_context>

<pallas_src>
import functools

import jax
import jax.numpy as jnp
from jax.experimental import pallas as pl
from jax.experimental.pallas import tpu as pltpu


def _linear_kernel(w_ref, b_ref, x_ref, o_ref):
    # w_ref: (C_out, C_in)   b_ref: (C_out, 1)
    # x_ref: (C_in, mt)      o_ref: (C_out, mt)
    acc = jnp.dot(w_ref[...], x_ref[...], preferred_element_type=jnp.float32)
    o_ref[...] = (acc + b_ref[...].astype(jnp.float32)).astype(o_ref.dtype)


def _vmem_limit_bytes():
    """Per-generation VMEM budget with headroom for Mosaic internal scratch."""
    try:
        cap = pltpu.get_tpu_info().vmem_capacity_bytes
    except Exception:
        cap = 64 << 20  # conservative fallback (v7x-sized)
    # ~48 MiB on 64 MiB parts (v7x), ~96 MiB on 128 MiB parts (v5e/v6e).
    return min(int(cap * 3 // 4), 100 << 20)


@functools.partial(jax.jit, static_argnames=("m_tile", "out_dtype"))
def linear1x1(x, weight, bias, *, m_tile=32768, out_dtype=None):
    """1x1 Conv2d with bias (the `linear` module's forward pass).

    x:      (N, C_in, V, L)
    weight: (C_out, C_in, 1, 1) or (C_out, C_in)
    bias:   (C_out,)
    returns (N, C_out, V, L) in `out_dtype` (defaults to x.dtype)
    """
    N, Cin, V, L = x.shape
    Cout = weight.shape[0]
    w2 = weight.reshape(Cout, Cin)
    b2 = bias.reshape(Cout, 1)
    out_dtype = x.dtype if out_dtype is None else jnp.dtype(out_dtype)

    # Native layout: contraction axis (C_in) on sublanes, V*L on lanes.
    VL = V * L
    x3 = x.reshape(N, Cin, VL)  # free (contiguous) reshape, no data movement

    vmem_limit = _vmem_limit_bytes()

    # --- pick the M tile --------------------------------------------------
    LANE = 128
    # Double-buffered input+output slabs must fit comfortably in VMEM.
    bytes_per_col = Cin * x.dtype.itemsize + Cout * out_dtype.itemsize
    mt_cap = max(LANE, (vmem_limit // 2) // (2 * bytes_per_col))
    if VL <= LANE:
        mt = VL                              # block == full dim (always legal)
    else:
        vl_r = pl.cdiv(VL, LANE) * LANE      # VL rounded up to a lane multiple
        mt = min(m_tile, mt_cap, vl_r)
        if mt >= 512:
            mt = (mt // 512) * 512           # keep stores/MXU tiles unmasked
        else:
            mt = max(LANE, (mt // LANE) * LANE)

    grid = (N, pl.cdiv(VL, mt))              # no explicit padding needed

    cost = pl.CostEstimate(
        flops=2 * N * Cout * Cin * VL,
        transcendentals=0,
        bytes_accessed=(x3.size * x.dtype.itemsize
                        + N * Cout * VL * out_dtype.itemsize
                        + w2.size * w2.dtype.itemsize
                        + b2.size * b2.dtype.itemsize),
    )

    out3 = pl.pallas_call(
        _linear_kernel,
        out_shape=jax.ShapeDtypeStruct((N, Cout, VL), out_dtype),
        grid_spec=pltpu.PrefetchScalarGridSpec(
            num_scalar_prefetch=0,
            grid=grid,
            in_specs=[
                # weight & bias: tiny, same block every step (stay resident)
                pl.BlockSpec((Cout, Cin), lambda n, m: (0, 0)),
                pl.BlockSpec((Cout, 1), lambda n, m: (0, 0)),
                # one lane-dense (C_in, mt) slab of x per grid step; batch
                # dim squeezed out of the kernel ref
                pl.BlockSpec((None, Cin, mt), lambda n, m: (n, 0, m)),
            ],
            out_specs=pl.BlockSpec((None, Cout, mt), lambda n, m: (n, 0, m)),
        ),
        compiler_params=pltpu.CompilerParams(
            dimension_semantics=("parallel", "parallel"),
            vmem_limit_bytes=vmem_limit,
        ),
        cost_estimate=cost,
    )(w2, b2, x3)

    # Free reshape back to (N, C_out, V, L) — no transpose, no slice.
    return out3.reshape(N, Cout, V, L)


if __name__ == "__main__":
    key = jax.random.PRNGKey(0)
    kx, kw, kb = jax.random.split(key, 3)

    # Small shapes consistent with the module:
    # batch=2, c_in=4, spatial V=16, seq L=8, c_out (hidden) = 32.
    N, Cin, V, L, Cout = 2, 4, 16, 8, 32
    x = jax.random.normal(kx, (N, Cin, V, L), dtype=jnp.float32)
    weight = jax.random.normal(kw, (Cout, Cin, 1, 1), dtype=jnp.float32) * 0.1
    bias = jax.random.normal(kb, (Cout,), dtype=jnp.float32)

    out = jax.block_until_ready(linear1x1(x, weight, bias))

    # Reference: 1x1 conv == channel contraction + bias broadcast.
    ref = jnp.einsum('ncvl,oc->novl', x, weight.reshape(Cout, Cin)) \
        + bias.reshape(1, Cout, 1, 1)
    assert out.shape == (N, Cout, V, L)
    assert out.dtype == x.dtype
    assert jnp.allclose(out, ref, atol=1e-4, rtol=1e-4)

    print("KERNEL_OK")
</pallas_src>

<mosaic_0001>
module attributes {stable_mosaic.version = 11 : i64} {
  func.func @_linear_kernel(%arg0: i32, %arg1: i32, %arg2: memref<32x4xf32, #tpu.memory_space<vmem>>, %arg3: memref<32x1xf32, #tpu.memory_space<vmem>>, %arg4: memref<1x4x128xf32, #tpu.memory_space<vmem>>, %arg5: memref<1x32x128xf32, #tpu.memory_space<vmem>>) attributes {dimension_semantics = [#tpu.dimension_semantics<parallel>, #tpu.dimension_semantics<parallel>], iteration_bounds = array<i64: 2, 1>, scalar_prefetch = 0 : i64, scratch_operands = 0 : i64, tpu.core_type = #tpu.core_type<tc>, window_params = [{pipeline_mode = #tpu.pipeline_mode<synchronous>, transform_indices = @transform_0, window_bounds = array<i64: 32, 4>}, {pipeline_mode = #tpu.pipeline_mode<synchronous>, transform_indices = @transform_1, window_bounds = array<i64: 32, 1>}, {transform_indices = @transform_2, window_bounds = array<i64: 1, 4, 128>}, {transform_indices = @transform_3, window_bounds = array<i64: 1, 32, 128>}]} {
    %c0 = arith.constant 0 : index
    %c0_0 = arith.constant 0 : index
    %0 = vector.load %arg2[%c0, %c0_0] : memref<32x4xf32, #tpu.memory_space<vmem>>, vector<32x4xf32>
    %c0_1 = arith.constant 0 : index
    %c0_2 = arith.constant 0 : index
    %c0_3 = arith.constant 0 : index
    %1 = vector.load %arg4[%c0_1, %c0_2, %c0_3] : memref<1x4x128xf32, #tpu.memory_space<vmem>>, vector<1x4x128xf32>
    %2 = vector.shape_cast %1 : vector<1x4x128xf32> to vector<4x128xf32>
    %cst = arith.constant dense<0.000000e+00> : vector<32x128xf32>
    %3 = tpu.matmul %0, %2, %cst {dimension_numbers = #tpu.dot_dimension_numbers<[1], [0], [0], [1], [0, 0, 1, 1], [], []>} : vector<32x4xf32>, vector<4x128xf32>, vector<32x128xf32> -> vector<32x128xf32>
    %c0_4 = arith.constant 0 : index
    %c0_5 = arith.constant 0 : index
    %4 = vector.load %arg3[%c0_4, %c0_5] : memref<32x1xf32, #tpu.memory_space<vmem>>, vector<32x1xf32>
    %5 = vector.broadcast %4 : vector<32x1xf32> to vector<32x128xf32>
    %6 = arith.addf %3, %5 : vector<32x128xf32>
    %c0_6 = arith.constant 0 : index
    %c0_7 = arith.constant 0 : index
    %c0_8 = arith.constant 0 : index
    %7 = vector.load %arg5[%c0_6, %c0_7, %c0_8] : memref<1x32x128xf32, #tpu.memory_space<vmem>>, vector<1x32x128xf32>
    %8 = vector.shape_cast %7 : vector<1x32x128xf32> to vector<32x128xf32>
    %9 = vector.shape_cast %6 : vector<32x128xf32> to vector<1x32x128xf32>
    tpu.vector_store %arg5[%c0_6, %c0_7, %c0_8], %9 {strides = array<i32>} : memref<1x32x128xf32, #tpu.memory_space<vmem>>, vector<1x32x128xf32>,
    return
  }
  func.func @transform_0(%arg0: i32, %arg1: i32) -> (i32, i32) {
    %c0_i32 = arith.constant 0 : i32
    %c0_i32_0 = arith.constant 0 : i32
    %c0_i32_1 = arith.constant 0 : i32
    return %c0_i32, %c0_i32_0 : i32, i32
  }
  func.func @transform_1(%arg0: i32, %arg1: i32) -> (i32, i32) {
    %c0_i32 = arith.constant 0 : i32
    %c0_i32_0 = arith.constant 0 : i32
    %c0_i32_1 = arith.constant 0 : i32
    return %c0_i32, %c0_i32_0 : i32, i32
  }
  func.func @transform_2(%arg0: i32, %arg1: i32) -> (i32, i32, i32) {
    %c0_i32 = arith.constant 0 : i32
    %c0_i32_0 = arith.constant 0 : i32
    return %arg0, %c0_i32, %arg1 : i32, i32, i32
  }
  func.func @transform_3(%arg0: i32, %arg1: i32) -> (i32, i32, i32) {
    %c0_i32 = arith.constant 0 : i32
    %c0_i32_0 = arith.constant 0 : i32
    return %arg0, %c0_i32, %arg1 : i32, i32, i32
  }
}

</mosaic_0001>

<bundles_post_ra>
// kernel: linear1x1.1
= control target key start
LH: loop header
LB: loop body
LE: loop exit
PB: predicated region body
PF: predicated region fallthrough
CT: control target
= control target key end

     0   :  { %s517_s12 = smov 0   ;;  %s519_s13 = smov 0   ;;  %s578_s0 = inlined_call_operand.vmem [shape: f32[32,4], index: 0, kind: input, shape index: {}]   ;;  %s579_s1 = inlined_call_operand.vmem [shape: f32[32,1], index: 1, kind: input, shape index: {}]   ;;  %s580_s2 = inlined_call_operand.vmem [shape: f32[2,4,128], index: 2, kind: input, shape index: {}]   ;;  %s581_s3 = inlined_call_operand.vmem [shape: f32[2,32,128], index: 3, kind: output, shape index: {}]  }
   0x1   :  { %s521_s14 = smov 0  }
   0x2 LB: > { %s25_s15 = sadd.s32 1, %s490_s13  ;;  %p418_p0 = scmp.ge.s32.totalorder %s494_s14, 1  ;;  %s494_s14 = sphi %s521_s14, %s13_s14   ;;  %s490_s13 = sphi %s519_s13, %s583_s13   ;;  %s486_s12 = sphi %s517_s12, %s582_s12  }
   0x3   : > { %p27_p1 = scmp.ge.s32.totalorder %s25_s15, 2  ;;  %p155_p2 = scmp.lt.s32.totalorder %s494_s14, 3 }
   0x5   : > { %s585_s15 = smov (%p27_p1, %s25_s15), 0  ;;  %p156_p3 = pnand %p418_p0, %p155_p2 }
   0x6   : > { %p184_p4 = scmp.lt.s32.totalorder (!%p156_p3), %s486_s12, 1  ;;  %v199_v0 = vld [vmem:[%s578_s0] sm:$0xff] (!%p156_p3)  ;;  %vm228_vm0 = vcmask (!%p156_p3), 31744   ;;  %v201_v1 = vld [vmem:[%s578_s0 + $0x10] sm:$0xff] (!%p156_p3)  ;;  %v496_v4 = vmov (!%p156_p3), 0   ;;  %vm241_vm1 = vcmask (!%p156_p3), 1043456  }
   0x7   : > { %159 = sbr.rel (%p156_p3) target bundleno = 236 (0xec), region = 32  ;;  %437 = vmatprep.mubr.msk.f32.mxu0 (!%p156_p3), %vm228_vm0, %v199_v0  ;;  %440 = vmatprep.mubr.msk.f32.mxu1 (!%p156_p3), %vm228_vm0, %v201_v1  ;;  %v206_v2 = vld [vmem:[%s579_s1 + $0x10] sm:$0xff] (!%p156_p3)  ;;  %v204_v3 = vld [vmem:[%s579_s1] sm:$0xff] (!%p156_p3)  ;;  %v200_v6 = vld [vmem:[%s578_s0 + $0x8] sm:$0xff] (!%p156_p3) }
   0x8   : > { %471 = vset.pattern.permute.xlu1 (!%p156_p3), %v496_v4  ;;  %470 = vset.pattern.permute.xlu0 (!%p156_p3), %v496_v4  ;;  %v202_v7 = vld [vmem:[%s578_s0 + $0x18] sm:$0xff] (!%p156_p3)  ;;  %v205_v9 = vld [vmem:[%s579_s1 + $0x8] sm:$0xff] (!%p156_p3) }
   0x9   : > { %220 = vperm.xlu1 (!%p156_p3), %471, %v206_v2   ;;  %210 = vperm.xlu0 (!%p156_p3), %470, %v204_v3   ;;  %v207_v8 = vld [vmem:[%s579_s1 + $0x18] sm:$0xff] (!%p156_p3) }
   0xd   : > { %225 = vperm.xlu1 (!%p156_p3), %471, %v207_v8   ;;  %215 = vperm.xlu0 (!%p156_p3), %470, %v205_v9  }
   0xe   : > { %s587_s12 = smov (!%p184_p4, %s486_s12), 1 }
   0xf   : > { %s419_s24 = sshll.u32 %s587_s12, 2  ;;  %s429_s9 = sshll.u32 %s587_s12, 5 }
  0x10   : > { %s190_s27 = scalar_lea.vmem %s580_s2, %s419_s24  ;;  %s198_s16 = scalar_lea.vmem %s581_s3, %s429_s9 }
  0x11   : > { %v203_v5 = vld [vmem:[%s190_s27] sm:$0xf] }
  0x12   : > { %435 = vmatprep.subr.msk.mxu0 %vm241_vm1, %v203_v5  ;;  %443 = vmatprep.subr.msk.mxu1 %vm241_vm1, %v203_v5 }
  0x13   : > { %436 = vmatpush3.msk.msra.mxu0 %vm241_vm1, %v203_v5  ;;  %444 = vmatpush3.msk.msra.mxu1 %vm241_vm1, %v203_v5 }
  0x14   : > { %438 = vmatmul.mubr.msk.f32.vlgmr.msra.gmra.mrb[0].mxu0 %vm228_vm0, %v200_v6  ;;  %441 = vmatmul.mubr.msk.f32.vlgmr.msra.gmra.mrb[0].mxu1 %vm228_vm0, %v202_v7 }
  0x88   : > { %v221_v10 = vpop.permute.xlu1 %220  ;;  %v211_v11 = vpop.permute.xlu0 %210 }
  0x8c   : > { %v226_v12 = vpop.permute.xlu1 %225  ;;  %v216_v13 = vpop.permute.xlu0 %215 }
  0xe7   : > { %v439_v14 = vpop.f32.mrb[0].mxu0  ;;  %v442_v15 = vpop.f32.mrb[0].mxu1 }
  0xe8   : > { %v317_v16 = vadd.f32 %v439_v14, %v216_v13  ;;  %v327_v17 = vadd.f32 %v442_v15, %v226_v12  ;;  %v311_v18 = vpop.f32.mrb[1].mxu0  ;;  %v321_v19 = vpop.f32.mrb[1].mxu1 }
  0xe9   : > { %v312_v20 = vadd.f32 %v311_v18, %v211_v11  ;;  %v322_v21 = vadd.f32 %v321_v19, %v221_v10 }
  0xea   : > { %331 = vst [vmem:[%s198_s16 + $0x8] sm:$0xff] %v317_v16  ;;  %333 = vst [vmem:[%s198_s16 + $0x18] sm:$0xff] %v327_v17 }
  0xeb   : > { %330 = vst [vmem:[%s198_s16] sm:$0xff] %v312_v20  ;;  %332 = vst [vmem:[%s198_s16 + $0x10] sm:$0xff] %v322_v21 }
  0xec PF: > { %s13_s14 = sadd.s32 1, %s494_s14   ;;  %s582_s12 = smov %s490_s13 }
  0xed   : > { %p10_p5 = scmp.ge.s32.totalorder %s13_s14, 4   ;;  %s583_s13 = smov %s585_s15 }
  0xef   :  { %12 = sbr.rel (!%p10_p5) target bundleno = 2 (0x2), region = 62 }

</bundles_post_ra>
